<compile_context>
chip_gen: v7x
topology: tpu7x:2x2x1
jax: 0.10.0
libtpu: 0.0.40
codegen_flags: <defaults>
</compile_context>

<pallas_src>
import functools

import jax
import jax.numpy as jnp
from jax import lax
from jax.experimental import pallas as pl
from jax.experimental.pallas import tpu as pltpu

ALPHA = 0.25
GAMMA = 2.0

LANES = 128
SUBLANES = 8
MAX_TILE_BYTES = 2 * 1024 * 1024   # per-input block (HBM-roofline sweet spot)
CHUNK_ROWS = 512                   # inner compute chunk (256 KiB f32) to bound VMEM temps


def _round_up(a, b):
    return ((a + b - 1) // b) * b


def _focal_sum_kernel(x_ref, t_ref, out_ref, *, gamma, tile_rows, chunk_rows,
                      n_valid, needs_mask):
    i = pl.program_id(0)

    # Output block is resident across the whole (arbitrary) grid -> use as accumulator.
    @pl.when(i == 0)
    def _():
        out_ref[...] = jnp.zeros_like(out_ref)

    n_chunks = tile_rows // chunk_rows
    chunk_elems = chunk_rows * LANES
    tile_elems = tile_rows * LANES

    def chunk_partial(c, masked):
        r0 = pl.multiple_of(c * chunk_rows, chunk_rows)
        x = x_ref[pl.ds(r0, chunk_rows), :].astype(jnp.float32)
        t = t_ref[pl.ds(r0, chunk_rows), :].astype(jnp.float32)

        # Numerically stable BCE-with-logits (== torch BCEWithLogitsLoss, reduction='none'):
        #   bce = max(x, 0) - x*t + log1p(exp(-|x|))
        bce = jnp.maximum(x, 0.0) - x * t + jnp.log1p(jnp.exp(-jnp.abs(x)))
        pt = jnp.exp(-bce)
        one_minus_pt = 1.0 - pt

        g = float(gamma)
        if g == 2.0:
            mod = one_minus_pt * one_minus_pt            # avoid pow -> no extra EUP work
        elif g == int(g) and g >= 0:
            mod = lax.integer_pow(one_minus_pt, int(g))
        else:
            # clamp: exp rounding can make pt marginally > 1 -> NaN in a fractional pow
            mod = jnp.maximum(one_minus_pt, 0.0) ** g

        f = mod * bce                                    # alpha hoisted to the wrapper

        if masked:
            # Zero padded-tail / out-of-range (overhanging-block garbage) elements.
            start = i * tile_elems + c * chunk_elems
            row = lax.broadcasted_iota(jnp.int32, (chunk_rows, LANES), 0)
            col = lax.broadcasted_iota(jnp.int32, (chunk_rows, LANES), 1)
            flat = row * LANES + col
            f = jnp.where(flat < (n_valid - start), f, 0.0)

        # vreg-shaped (8,128) partial sum: pure VPU adds, no per-step cross-lane reduce.
        return f.reshape(chunk_rows // SUBLANES, SUBLANES, LANES).sum(axis=0)

    def accumulate(masked):
        acc = lax.fori_loop(
            0, n_chunks,
            lambda c, a: a + chunk_partial(c, masked),
            jnp.zeros((SUBLANES, LANES), jnp.float32),
            unroll=True)
        out_ref[...] += acc

    if not needs_mask:
        accumulate(False)
    else:
        tile_end = (i + 1) * tile_elems

        @pl.when(tile_end <= n_valid)        # all tiles except the single boundary tile
        def _():
            accumulate(False)

        @pl.when(tile_end > n_valid)         # boundary tile only: apply the tail mask
        def _():
            accumulate(True)


def focal_loss(logits, targets, alpha=ALPHA, gamma=GAMMA, reduction="mean"):
    """Pallas TPU focal loss. logits/targets: same shape (e.g. NCHW)."""
    assert logits.shape == targets.shape
    if reduction not in ("mean", "sum"):
        # TODO(synk): reduction='none' (elementwise output) is not wired through this
        # scalar-reduction kernel; the module's default ('mean') and 'sum' are covered.
        raise NotImplementedError("reduction='none' not implemented in kernel path")

    n = logits.size
    x = logits.reshape(-1)
    t = targets.reshape(-1)

    itemsize = max(jnp.dtype(logits.dtype).itemsize, jnp.dtype(targets.dtype).itemsize)
    row_align = SUBLANES * max(1, 4 // itemsize)        # f32: 8 rows, bf16: 16, int8: 32
    max_tile_rows = max(CHUNK_ROWS,
                        (MAX_TILE_BYTES // (LANES * itemsize)) // CHUNK_ROWS * CHUNK_ROWS)

    rows_exact = pl.cdiv(n, LANES)
    if rows_exact >= max_tile_rows:
        # Large input: full-size tiles; the final grid block may overhang the array
        # (handled by the in-kernel mask), so no row padding / pad copy is needed.
        tile_rows, chunk_rows = max_tile_rows, CHUNK_ROWS
        rows_used = rows_exact
    elif rows_exact > CHUNK_ROWS:
        rows_used = _round_up(rows_exact, CHUNK_ROWS)   # single tile, uniform 512-row chunks
        tile_rows, chunk_rows = rows_used, CHUNK_ROWS
    else:
        rows_used = _round_up(rows_exact, row_align)    # tiny input: one tile, one chunk
        tile_rows, chunk_rows = rows_used, rows_used

    padded = rows_used * LANES
    if padded != n:
        # For n % 128 == 0 (the common case) this branch is skipped and the reshape below
        # is a zero-copy bitcast.
        # TODO(synk): large inputs with n % 128 != 0 still pay a full-array pad copy here;
        # a zero-copy ragged path would need 1-D blocks + in-kernel relayout.
        x = jnp.pad(x, (0, padded - n))
        t = jnp.pad(t, (0, padded - n))

    x2 = x.reshape(rows_used, LANES)
    t2 = t.reshape(rows_used, LANES)

    num_tiles = pl.cdiv(rows_used, tile_rows)
    needs_mask = (num_tiles * tile_rows * LANES) != n

    in_spec = pl.BlockSpec((tile_rows, LANES), lambda i: (i, 0))

    # TODO(synk): on v7x, sharding this grid axis across the 2 TensorCores would need
    # pltpu.CORE_PARALLEL (plain "parallel" changes nothing in codegen); kept serial here.
    partials = pl.pallas_call(
        functools.partial(_focal_sum_kernel, gamma=gamma, tile_rows=tile_rows,
                          chunk_rows=chunk_rows, n_valid=n, needs_mask=needs_mask),
        out_shape=jax.ShapeDtypeStruct((SUBLANES, LANES), jnp.float32),
        grid_spec=pltpu.PrefetchScalarGridSpec(
            num_scalar_prefetch=0,
            grid=(num_tiles,),
            in_specs=[in_spec, in_spec],
            out_specs=pl.BlockSpec((SUBLANES, LANES), lambda i: (0, 0)),
        ),
        compiler_params=pltpu.CompilerParams(
            dimension_semantics=("arbitrary",),
        ),
        cost_estimate=pl.CostEstimate(
            flops=12 * n,
            transcendentals=3 * n,
            bytes_accessed=n * (jnp.dtype(logits.dtype).itemsize
                                + jnp.dtype(targets.dtype).itemsize)
                           + SUBLANES * LANES * 4,
        ),
    )(x2, t2)

    total = alpha * jnp.sum(partials)       # tiny final reduce (1024 f32) + hoisted alpha
    if reduction == "mean":
        return total / jnp.float32(n)
    return total


def _reference_focal_loss(logits, targets, alpha=ALPHA, gamma=GAMMA, reduction="mean"):
    x = logits.astype(jnp.float32)
    t = targets.astype(jnp.float32)
    bce = jnp.maximum(x, 0.0) - x * t + jnp.log1p(jnp.exp(-jnp.abs(x)))
    pt = jnp.exp(-bce)
    f = alpha * (1.0 - pt) ** gamma * bce
    return jnp.mean(f) if reduction == "mean" else jnp.sum(f)


if __name__ == "__main__":
    key = jax.random.PRNGKey(0)
    k1, k2, k3, k4, k5, k6 = jax.random.split(key, 6)

    # 1) small NCHW-shaped inputs (logits + binary targets), lane-aligned, zero-copy path
    shape = (2, 4, 16, 16)
    logits = jax.random.normal(k1, shape, dtype=jnp.float32)
    targets = (jax.random.uniform(k2, shape) > 0.5).astype(jnp.float32)
    out = jax.block_until_ready(focal_loss(logits, targets, reduction="mean"))
    ref = _reference_focal_loss(logits, targets)
    assert jnp.allclose(out, ref, rtol=1e-5, atol=1e-6), (out, ref)

    out_s = jax.block_until_ready(focal_loss(logits, targets, reduction="sum"))
    ref_s = _reference_focal_loss(logits, targets, reduction="sum")
    assert jnp.allclose(out_s, ref_s, rtol=1e-5, atol=1e-5), (out_s, ref_s)

    # 2) non-tile-aligned shape exercises the gated in-kernel tail mask
    shape2 = (3, 5, 7)
    logits2 = jax.random.normal(k3, shape2, dtype=jnp.float32)
    targets2 = (jax.random.uniform(k4, shape2) > 0.5).astype(jnp.float32)
    out2 = jax.block_until_ready(focal_loss(logits2, targets2, reduction="mean"))
    ref2 = _reference_focal_loss(logits2, targets2)
    assert jnp.allclose(out2, ref2, rtol=1e-5, atol=1e-6), (out2, ref2)

    # 3) multi-tile path: 2 grid steps, chunked inner loop, overhanging masked final block
    shape3 = (2, 4, 320, 320)
    logits3 = jax.random.normal(k5, shape3, dtype=jnp.float32)
    targets3 = (jax.random.uniform(k6, shape3) > 0.5).astype(jnp.float32)
    out3 = jax.block_until_ready(focal_loss(logits3, targets3, reduction="mean"))
    ref3 = _reference_focal_loss(logits3, targets3)
    assert jnp.allclose(out3, ref3, rtol=1e-4, atol=1e-6), (out3, ref3)

    print("KERNEL_OK")
</pallas_src>

<mosaic_0001>
module attributes {stable_mosaic.version = 11 : i64} {
  func.func @_focal_sum_kernel(%arg0: i32, %arg1: memref<16x128xf32, #tpu.memory_space<vmem>>, %arg2: memref<16x128xf32, #tpu.memory_space<vmem>>, %arg3: memref<8x128xf32, #tpu.memory_space<vmem>>) attributes {dimension_semantics = [#tpu.dimension_semantics<arbitrary>], iteration_bounds = array<i64: 1>, scalar_prefetch = 0 : i64, scratch_operands = 0 : i64, tpu.core_type = #tpu.core_type<tc>, window_params = [{transform_indices = @transform_0, window_bounds = array<i64: 16, 128>}, {transform_indices = @transform_1, window_bounds = array<i64: 16, 128>}, {pipeline_mode = #tpu.pipeline_mode<synchronous>, transform_indices = @transform_2, window_bounds = array<i64: 8, 128>}]} {
    %c0_i32 = arith.constant 0 : i32
    %0 = arith.cmpi eq, %arg0, %c0_i32 : i32
    %1 = arith.extui %0 : i1 to i32
    %c0_i32_0 = arith.constant 0 : i32
    %2 = arith.cmpi ne, %1, %c0_i32_0 : i32
    scf.if %2 {
      %cst_12 = arith.constant 0.000000e+00 : f32
      %33 = vector.broadcast %cst_12 : f32 to vector<8x128xf32>
      %c0_13 = arith.constant 0 : index
      %c0_14 = arith.constant 0 : index
      %34 = vector.load %arg3[%c0_13, %c0_14] : memref<8x128xf32, #tpu.memory_space<vmem>>, vector<8x128xf32>
      tpu.vector_store %arg3[%c0_13, %c0_14], %33 {strides = array<i32>} : memref<8x128xf32, #tpu.memory_space<vmem>>, vector<8x128xf32>,
    } else {
    }
    %cst = arith.constant 0.000000e+00 : f32
    %3 = vector.broadcast %cst : f32 to vector<8x128xf32>
    %c0_i32_1 = arith.constant 0 : i32
    %c16_i32 = arith.constant 16 : i32
    %4 = arith.muli %c0_i32_1, %c16_i32 : i32
    %5 = tpu.assume_multiple %4, 16 : i32
    %6 = arith.index_cast %5 : i32 to index
    %c0 = arith.constant 0 : index
    %7 = vector.load %arg1[%6, %c0] : memref<16x128xf32, #tpu.memory_space<vmem>>, vector<16x128xf32>
    %8 = arith.index_cast %5 : i32 to index
    %c0_2 = arith.constant 0 : index
    %9 = vector.load %arg2[%8, %c0_2] : memref<16x128xf32, #tpu.memory_space<vmem>>, vector<16x128xf32>
    %cst_3 = arith.constant 0.000000e+00 : f32
    %10 = vector.broadcast %cst_3 : f32 to vector<16x128xf32>
    %11 = arith.maximumf %7, %10 : vector<16x128xf32>
    %12 = arith.mulf %7, %9 : vector<16x128xf32>
    %13 = arith.subf %11, %12 : vector<16x128xf32>
    %14 = math.absf %7 : vector<16x128xf32>
    %cst_4 = arith.constant 0.000000e+00 : f32
    %15 = vector.broadcast %cst_4 : f32 to vector<16x128xf32>
    %16 = arith.subf %15, %14 : vector<16x128xf32>
    %17 = math.exp %16 : vector<16x128xf32>
    %18 = math.log1p %17 : vector<16x128xf32>
    %19 = arith.addf %13, %18 : vector<16x128xf32>
    %cst_5 = arith.constant 0.000000e+00 : f32
    %20 = vector.broadcast %cst_5 : f32 to vector<16x128xf32>
    %21 = arith.subf %20, %19 : vector<16x128xf32>
    %22 = math.exp %21 : vector<16x128xf32>
    %cst_6 = arith.constant 1.000000e+00 : f32
    %23 = vector.broadcast %cst_6 : f32 to vector<16x128xf32>
    %24 = arith.subf %23, %22 : vector<16x128xf32>
    %25 = arith.mulf %24, %24 : vector<16x128xf32>
    %26 = arith.mulf %25, %19 : vector<16x128xf32>
    %27 = vector.shape_cast %26 : vector<16x128xf32> to vector<2x8x128xf32>
    %cst_7 = arith.constant dense<0.000000e+00> : vector<8x128xf32>
    %28 = vector.multi_reduction <add>, %27, %cst_7 [0] : vector<2x8x128xf32> to vector<8x128xf32>
    %29 = arith.addf %3, %28 : vector<8x128xf32>
    %c1_i32 = arith.constant 1 : i32
    %c0_8 = arith.constant 0 : index
    %c0_9 = arith.constant 0 : index
    %30 = vector.load %arg3[%c0_8, %c0_9] : memref<8x128xf32, #tpu.memory_space<vmem>>, vector<8x128xf32>
    %31 = arith.addf %30, %29 : vector<8x128xf32>
    %c0_10 = arith.constant 0 : index
    %c0_11 = arith.constant 0 : index
    %32 = vector.load %arg3[%c0_10, %c0_11] : memref<8x128xf32, #tpu.memory_space<vmem>>, vector<8x128xf32>
    tpu.vector_store %arg3[%c0_10, %c0_11], %31 {strides = array<i32>} : memref<8x128xf32, #tpu.memory_space<vmem>>, vector<8x128xf32>,
    return
  }
  func.func @transform_0(%arg0: i32) -> (i32, i32) {
    %c0_i32 = arith.constant 0 : i32
    %c0_i32_0 = arith.constant 0 : i32
    return %arg0, %c0_i32 : i32, i32
  }
  func.func @transform_1(%arg0: i32) -> (i32, i32) {
    %c0_i32 = arith.constant 0 : i32
    %c0_i32_0 = arith.constant 0 : i32
    return %arg0, %c0_i32 : i32, i32
  }
  func.func @transform_2(%arg0: i32) -> (i32, i32) {
    %c0_i32 = arith.constant 0 : i32
    %c0_i32_0 = arith.constant 0 : i32
    %c0_i32_1 = arith.constant 0 : i32
    return %c0_i32, %c0_i32_0 : i32, i32
  }
}

</mosaic_0001>

<bundles_post_ra>
// kernel: tpu_custom_call.1
= control target key start
LH: loop header
LB: loop body
LE: loop exit
PB: predicated region body
PF: predicated region fallthrough
CT: control target
= control target key end

     0   :  { %7 = vsyncpa [#allocation3], 0  ;;  %s262_s0 = inlined_call_operand.hbm [shape: f32[16,128], index: 0, kind: input, shape index: {}]   ;;  %s263_s1 = inlined_call_operand.hbm [shape: f32[16,128], index: 1, kind: input, shape index: {}]   ;;  %s264_s2 = inlined_call_operand.hbm [shape: f32[8,128], index: 2, kind: output, shape index: {}]  }
   0x1   :  { %8 = vsyncpa [#allocation6], 0 }
   0x2   :  { %9 = vsyncpa [#allocation4], 0  ;;  %s206_s9 = smov [#allocation2]   ;;  %s134_s13 = scalar_lea.hbm %s262_s0, 256 }
   0x3   :  { %s15_s10 = sshll.u32 %s206_s9, 4  ;;  %p135_p0 = scmp.ne.s32.totalorder %s262_s0, %s134_s13  ;;  %s16_s10 = int_to_ptr.vmem [resolvable:$true] %s15_s10 }
   0x4   :  { %p138_p1 = scmp.lt.u32.totalorder %s134_s13, %s262_s0 }
   0x6   :  { %p140_p2 = pnand %p138_p1, %p135_p0 }
   0x8   :  { %143 = shalt.err (!%p140_p2)
}
   0x9   :  { %s144_s18 = scalar_lea.vmem %s16_s10, 256  ;;  %p149_p4 = scmp.lt.s32.totalorder %s16_s10, %s16_s10 }
   0xa   :  { %p145_p3 = scmp.ne.s32.totalorder %s16_s10, %s144_s18  ;;  %p150_p5 = scmp.lt.s32.totalorder %s144_s18, %s144_s18 }
   0xc   :  { %p151_p6 = por %p150_p5, %p149_p4 }
   0xe   :  { %p152_p7 = pnand %p151_p6, %p145_p3 }
  0x10   :  { %155 = shalt.err (!%p152_p7)
}
  0x11   :  { %s207_s19 = smov 128   ;;  %s208_s20 = smov 8  }
  0x12   :  { %21 = dma.hbm_to_vmem [thread:$0]  %s262_s0, 256, %s16_s10, [#allocation3], %s207_s19, %s207_s19, %s208_s20  }
  0x13   :  { %s209_s23 = smov [#allocation5]   ;;  %s156_s27 = scalar_lea.hbm %s263_s1, 256 }
  0x14   :  { %s27_s24 = sshll.u32 %s209_s23, 4  ;;  %p157_p8 = scmp.ne.s32.totalorder %s263_s1, %s156_s27  ;;  %s28_s24 = int_to_ptr.vmem [resolvable:$true] %s27_s24 }
  0x15   :  { %p160_p9 = scmp.lt.u32.totalorder %s156_s27, %s263_s1 }
  0x17   :  { %p162_p10 = pnand %p160_p9, %p157_p8 }
  0x19   :  { %165 = shalt.err (!%p162_p10)
}
  0x1a   :  { %s166_s4 = scalar_lea.vmem %s28_s24, 256  ;;  %p171_p12 = scmp.lt.s32.totalorder %s28_s24, %s28_s24 }
  0x1b   :  { %p167_p11 = scmp.ne.s32.totalorder %s28_s24, %s166_s4  ;;  %p172_p13 = scmp.lt.s32.totalorder %s166_s4, %s166_s4 }
  0x1d   :  { %p173_p0 = por %p172_p13, %p171_p12 }
  0x1f   :  { %p174_p1 = pnand %p173_p0, %p167_p11 }
  0x21   :  { %177 = shalt.err (!%p174_p1)
}
  0x22   :  { %33 = dma.hbm_to_vmem [thread:$0]  %s263_s1, 256, %s28_s24, [#allocation6], %s207_s19, %s207_s19, %s208_s20  }
  0x23   :  { %200 = dma.done.wait [#allocation3], 256  }
  0x24   :  { %201 = vsyncadd [#allocation3], 4294967040 }
  0x25   :  { %202 = dma.done.wait [#allocation6], 256  }
  0x26   :  { %203 = vsyncadd [#allocation6], 4294967040  ;;  %v45_v0 = vld [vmem:[#allocation2] sm:$0xff]  ;;  %v46_v1 = vld [vmem:[#allocation2 + $0x8] sm:$0xff]  ;;  %s210_s1 = smov [#allocation7]  }
  0x27   :  { %v55_v2 = vand.u32 2147483647, %v45_v0  ;;  %v56_v3 = vand.u32 2147483647, %v46_v1  ;;  %v47_v14 = vld [vmem:[#allocation5] sm:$0xff]  ;;  %v48_v15 = vld [vmem:[#allocation5 + $0x8] sm:$0xff] }
  0x28   :  { %v49_v17 = vmax.f32 %v45_v0, 0.0  ;;  %v51_v18 = vmul.f32 %v47_v14, %v45_v0  ;;  %v50_v21 = vmax.f32 %v46_v1, 0.0  ;;  %v52_v22 = vmul.f32 %v48_v15, %v46_v1  ;;  %s106_s6 = sshll.u32 %s210_s1, 4  ;;  %s107_s6 = int_to_ptr.vmem [resolvable:$true] %s106_s6 }
  0x29   :  { %v57_v4 = vsub.f32 0.0, %v55_v2  ;;  %v58_v5 = vsub.f32 0.0, %v56_v3  ;;  %s178_s7 = scalar_lea.vmem %s107_s6, 128  ;;  %p183_p3 = scmp.lt.s32.totalorder %s107_s6, %s107_s6 }
  0x2a   :  { %v53_v26 = vsub.f32 %v49_v17, %v51_v18  ;;  %v54_v29 = vsub.f32 %v50_v21, %v52_v22  ;;  %p179_p2 = scmp.ne.s32.totalorder %s107_s6, %s178_s7  ;;  %p184_p4 = scmp.lt.s32.totalorder %s178_s7, %s178_s7 }
  0x2b   :  { %v59_v6 = vmul.f32 1.442695, %v57_v4  ;;  %v61_v7 = vmul.f32 1.442695, %v58_v5 }
  0x2c   :  { %p185_p5 = por %p184_p4, %p183_p3 }
  0x2d   :  { %122 = vpow2.f32 %v59_v6 }
  0x2e   :  { %124 = vpow2.f32 %v61_v7  ;;  %p186_p6 = pnand %p185_p5, %p179_p2 }
  0x37   :  { %v123_v8 = vpop.eup %122 }
  0x38   :  { %v125_v9 = vpop.eup %124  ;;  %v63_v10 = vadd.f32 1.0, %v123_v8  ;;  %v66_v12 = vmul.f32 -0.5, %v123_v8  ;;  %v69_v19 = vand.u32 2147483647, %v123_v8 }
  0x39   :  { %v72_v11 = vadd.f32 1.0, %v125_v9  ;;  %v75_v13 = vmul.f32 -0.5, %v125_v9  ;;  %v78_v23 = vand.u32 2147483647, %v125_v9 }
  0x3a   :  { %126 = vlog2.f32 %v63_v10  ;;  %v67_v16 = vadd.f32 1.0, %v66_v12  ;;  %vm70_vm0 = vcmp.lt.f32.partialorder %v69_v19, 0.0004427343 }
  0x3b   :  { %128 = vlog2.f32 %v72_v11  ;;  %v76_v20 = vadd.f32 1.0, %v75_v13  ;;  %vm79_vm1 = vcmp.lt.f32.partialorder %v78_v23, 0.0004427343 }
  0x3c   :  { %v68_v24 = vmul.f32 %v123_v8, %v67_v16 }
  0x3d   :  { %v77_v27 = vmul.f32 %v125_v9, %v76_v20 }
  0x44   :  { %v127_v25 = vpop.eup %126 }
  0x45   :  { %v129_v28 = vpop.eup %128  ;;  %v65_v30 = vmul.f32 0.6931472, %v127_v25 }
  0x46   :  { %v74_v31 = vmul.f32 0.6931472, %v129_v28 }
  0x47   :  { %v71_v32 = vsel %vm70_vm0, %v68_v24, %v65_v30 }
  0x48   :  { %v80_v33 = vsel %vm79_vm1, %v77_v27, %v74_v31  ;;  %v81_v34 = vadd.f32 %v71_v32, %v53_v26 }
  0x49   :  { %v82_v35 = vadd.f32 %v80_v33, %v54_v29 }
  0x4a   :  { %v83_v36 = vsub.f32 0.0, %v81_v34 }
  0x4b   :  { %v84_v37 = vsub.f32 0.0, %v82_v35 }
  0x4c   :  { %v85_v38 = vmul.f32 1.442695, %v83_v36 }
  0x4d   :  { %v87_v39 = vmul.f32 1.442695, %v84_v37 }
  0x4e   :  { %130 = vpow2.f32 %v85_v38 }
  0x4f   :  { %132 = vpow2.f32 %v87_v39 }
  0x58   :  { %v131_v40 = vpop.eup %130 }
  0x59   :  { %v133_v41 = vpop.eup %132  ;;  %v89_v42 = vsub.f32 1.0, %v131_v40 }
  0x5a   :  { %v90_v43 = vsub.f32 1.0, %v133_v41 }
  0x5b   :  { %v91_v44 = vmul.f32 %v89_v42, %v89_v42 }
  0x5c   :  { %v92_v45 = vmul.f32 %v90_v43, %v90_v43 }
  0x5d   :  { %v93_v46 = vmul.f32 %v91_v44, %v81_v34 }
  0x5e   :  { %v94_v47 = vmul.f32 %v92_v45, %v82_v35 }
  0x60   :  { %v95_v48 = vadd.f32 %v94_v47, %v93_v46 }
  0x62   :  { %99 = vst [vmem:[#allocation7] sm:$0xff] %v95_v48 }
  0x63   :  { %189 = shalt.err (!%p186_p6)
}
  0x64   :  { %s190_s10 = scalar_lea.hbm %s264_s2, 128 }
  0x65   :  { %p191_p7 = scmp.ne.s32.totalorder %s264_s2, %s190_s10  ;;  %p194_p8 = scmp.lt.u32.totalorder %s190_s10, %s264_s2 }
  0x67   :  { %p196_p9 = pnand %p194_p8, %p191_p7 }
  0x69   :  { %199 = shalt.err (!%p196_p9)
}
  0x6a   :  { %109 = dma.vmem_to_hbm [thread:$0]  %s107_s6, 128, %s264_s2, [#allocation4]  }
  0x6b   :  { %204 = dma.done.wait [#allocation4], 128  }
  0x6c   :  { %205 = vsyncadd [#allocation4], 4294967168 }
  0x6d   :  { %113 = vsyncpa [#allocation3], 1 }
  0x6e   :  { %114 = vsyncpa [#allocation6], 1 }
  0x6f   :  { %115 = vsyncpa [#allocation4], 1 }

</bundles_post_ra>
